<compile_context>
chip_gen: v7x
topology: tpu7x:2x2x1
jax: 0.10.0
libtpu: 0.0.40
codegen_flags: <defaults>
</compile_context>

<pallas_src>
import functools

import jax
import jax.numpy as jnp
from jax.experimental import pallas as pl
from jax.experimental.pallas import tpu as pltpu

LEAKY_SLOPE = 0.2
BN_EPS = 1e-5
LANE = 128
SUBLANE = 8
VMEM_LIMIT = 32 * 1024 * 1024          # explicit; safe default on v5e/v6e/v7x
VMEM_BLOCK_BUDGET = 20 * 1024 * 1024   # target for double-buffered per-step blocks


def _round_up(x, m):
    return ((x + m - 1) // m) * m


def _choose_m_tiling(M, K, Np, y_bytes):
    """Largest M-tile whose double-buffered blocks stay well under scoped VMEM."""
    tm = 2048
    while tm > SUBLANE:
        need = 2 * (tm * K * 2 + K * Np * 2 + tm * Np * y_bytes) + 8 * Np * 4
        if need <= VMEM_BLOCK_BUDGET:
            break
        tm //= 2
    tm = min(tm, _round_up(M, SUBLANE))
    m_pad = _round_up(M, tm)
    return tm, m_pad


# ------------------------------ Pallas kernels ------------------------------ #

def _proj_kernel(a_ref, w_ref, b_ref, mask_ref, o_ref):
    # Fused emb_z / emb_c projection: out = A @ W + bias, LeakyReLU on z-columns only.
    acc = jnp.dot(a_ref[...], w_ref[...], preferred_element_type=jnp.float32)
    acc = acc + b_ref[...]
    leaky = jnp.where(acc >= 0, acc, LEAKY_SLOPE * acc)
    o_ref[...] = jnp.where(mask_ref[...] > 0, leaky, acc).astype(o_ref.dtype)


def _conv_stats_kernel(a_ref, w_ref, y_ref, stats_ref):
    # BN-layer pass 1: conv-as-matmul (bias=False) + per-tile column sum / sum-of-squares.
    acc = jnp.dot(a_ref[0], w_ref[0], preferred_element_type=jnp.float32)
    y_ref[0] = acc.astype(y_ref.dtype)
    s1 = jnp.sum(acc, axis=0, keepdims=True)
    s2 = jnp.sum(acc * acc, axis=0, keepdims=True)
    stats_ref[0, 0] = jnp.concatenate([s1, s2], axis=0)


def _conv_bias_tanh_kernel(a_ref, w_ref, b_ref, y_ref):
    # Final layer: conv-as-matmul + bias + Tanh (EUP), no BN.
    acc = jnp.dot(a_ref[0], w_ref[0], preferred_element_type=jnp.float32)
    acc = acc + b_ref[...]
    y_ref[0] = jnp.tanh(acc).astype(y_ref.dtype)


def _bn_leaky_kernel(y_ref, scale_ref, shift_ref, o_ref):
    # BN-layer pass 2: y * (gamma*rsqrt(var+eps)) + (beta - mean*scale), then LeakyReLU.
    z = y_ref[0].astype(jnp.float32) * scale_ref[...] + shift_ref[...]
    o_ref[0] = jnp.where(z >= 0, z, LEAKY_SLOPE * z).astype(o_ref.dtype)


# -------------------------- pallas_call wrappers ---------------------------- #

def _conv_pass1_bn(A, Wp, tm):
    P, M_pad, K = A.shape
    Np = Wp.shape[-1]
    m_tiles = M_pad // tm
    flops = 2 * P * M_pad * K * Np
    bytes_accessed = (A.size * 2 + Wp.size * 2 + P * M_pad * Np * 2
                      + P * m_tiles * 2 * Np * 4)
    return pl.pallas_call(
        _conv_stats_kernel,
        out_shape=(jax.ShapeDtypeStruct((P, M_pad, Np), jnp.bfloat16),
                   jax.ShapeDtypeStruct((P, m_tiles, 2, Np), jnp.float32)),
        grid=(P, m_tiles),
        in_specs=[pl.BlockSpec((1, tm, K), lambda p, i: (p, i, 0)),
                  pl.BlockSpec((1, K, Np), lambda p, i: (p, 0, 0))],
        out_specs=(pl.BlockSpec((1, tm, Np), lambda p, i: (p, i, 0)),
                   pl.BlockSpec((1, 1, 2, Np), lambda p, i: (p, i, 0, 0))),
        compiler_params=pltpu.CompilerParams(
            dimension_semantics=("parallel", "parallel"),
            vmem_limit_bytes=VMEM_LIMIT),
        cost_estimate=pl.CostEstimate(flops=int(flops), transcendentals=0,
                                      bytes_accessed=int(bytes_accessed)),
    )(A, Wp)


def _conv_pass1_tanh(A, Wp, bias, tm):
    P, M_pad, K = A.shape
    Np = Wp.shape[-1]
    m_tiles = M_pad // tm
    flops = 2 * P * M_pad * K * Np
    bytes_accessed = A.size * 2 + Wp.size * 2 + Np * 4 + P * M_pad * Np * 4
    return pl.pallas_call(
        _conv_bias_tanh_kernel,
        out_shape=jax.ShapeDtypeStruct((P, M_pad, Np), jnp.float32),
        grid=(P, m_tiles),
        in_specs=[pl.BlockSpec((1, tm, K), lambda p, i: (p, i, 0)),
                  pl.BlockSpec((1, K, Np), lambda p, i: (p, 0, 0)),
                  pl.BlockSpec((1, Np), lambda p, i: (0, 0))],
        out_specs=pl.BlockSpec((1, tm, Np), lambda p, i: (p, i, 0)),
        compiler_params=pltpu.CompilerParams(
            dimension_semantics=("parallel", "parallel"),
            vmem_limit_bytes=VMEM_LIMIT),
        cost_estimate=pl.CostEstimate(flops=int(flops),
                                      transcendentals=int(P * M_pad * Np),
                                      bytes_accessed=int(bytes_accessed)),
    )(A, Wp, bias)


def _bn_leaky_apply(Y, scale, shift, tm):
    P, M_pad, Np = Y.shape
    m_tiles = M_pad // tm
    return pl.pallas_call(
        _bn_leaky_kernel,
        out_shape=jax.ShapeDtypeStruct((P, M_pad, Np), jnp.bfloat16),
        grid=(P, m_tiles),
        in_specs=[pl.BlockSpec((1, tm, Np), lambda p, i: (p, i, 0)),
                  pl.BlockSpec((1, Np), lambda p, i: (0, 0)),
                  pl.BlockSpec((1, Np), lambda p, i: (0, 0))],
        out_specs=pl.BlockSpec((1, tm, Np), lambda p, i: (p, i, 0)),
        compiler_params=pltpu.CompilerParams(
            dimension_semantics=("parallel", "parallel"),
            vmem_limit_bytes=VMEM_LIMIT),
        cost_estimate=pl.CostEstimate(flops=int(3 * P * M_pad * Np), transcendentals=0,
                                      bytes_accessed=int(P * M_pad * Np * 4 + 2 * Np * 4)),
    )(Y, scale, shift)


# --------------------------- layout glue (parity) ---------------------------- #

def _parity_patches(h_nhwc):
    """LHS of the parity-decomposed ConvTranspose2d(k=4, s=2, p=1).

    Returns (4, B*H*W, 4*Cin) bf16.  Parity p = 2*ry + rx (output row/col parity);
    columns are ordered tap-major ((dy, dx) in {0,1}^2), channel-minor.  Each output
    pixel only needs 4 taps because 75% of a naive zero-inserted im2col is structurally
    zero -- this is the 4x FLOP / LHS-size reduction.
    """
    B, H, W, Cin = h_nhwc.shape
    x = jnp.pad(h_nhwc.astype(jnp.bfloat16), ((0, 0), (1, 1), (1, 1), (0, 0)))
    per_parity = []
    for ry in range(2):
        for rx in range(2):
            base = x[:, ry:ry + H + 1, rx:rx + W + 1, :]
            taps = [base[:, dy:dy + H, dx:dx + W, :]
                    for dy in range(2) for dx in range(2)]
            p = jnp.stack(taps, axis=3)                        # (B, H, W, 4, Cin)
            per_parity.append(p.reshape(B * H * W, 4 * Cin))
    return jnp.stack(per_parity, axis=0)                       # (4, M, 4*Cin)


def _parity_weights(w_pt, n_pad):
    """Per-parity 2x2 tap weights: W_par[p][tap*Cin + c, o] = W[c, o, 3-ry-2dy, 3-rx-2dx],
    zero-padded to n_pad output columns (lane-dense stores)."""
    Cin, Cout = w_pt.shape[0], w_pt.shape[1]
    per_parity = []
    for ry in range(2):
        for rx in range(2):
            taps = [w_pt[:, :, 3 - ry - 2 * dy, 3 - rx - 2 * dx]
                    for dy in range(2) for dx in range(2)]      # each (Cin, Cout)
            per_parity.append(jnp.stack(taps, axis=0).reshape(4 * Cin, Cout))
    w = jnp.stack(per_parity, axis=0)                           # (4, 4*Cin, Cout)
    w = jnp.pad(w, ((0, 0), (0, 0), (0, n_pad - Cout)))
    return w.astype(jnp.bfloat16)


def _reassemble(out_par, B, H, W, Cout):
    """(4, B*H*W, Cout) parity layout -> (B, 2H, 2W, Cout) NHWC."""
    out = out_par.reshape(2, 2, B, H, W, Cout)                  # (ry, rx, b, qy, qx, o)
    out = jnp.transpose(out, (2, 3, 0, 4, 1, 5))                # (b, qy, ry, qx, rx, o)
    return out.reshape(B, 2 * H, 2 * W, Cout)


# ------------------------------- layer ops ----------------------------------- #

def fused_projection(z, emb, wz, bz, wc, bc):
    """emb_z (ConvT SxS from 1x1 + LeakyReLU) and emb_c (ConvT, no act) fused into ONE
    Pallas matmul via a block-diagonal weight over the concatenated [z | emb] LHS.
    Returns the channel-concatenated NHWC feature map (B, S, S, cz + 1) in bf16."""
    B, latent = z.shape
    emb_dim = emb.shape[1]
    cz, S = wz.shape[1], wz.shape[2]
    Ctot = cz + 1
    Kd, Np = latent + emb_dim, S * S * Ctot

    wf = jnp.zeros((Kd, S, S, Ctot), jnp.float32)
    wf = wf.at[:latent, :, :, :cz].set(jnp.transpose(wz, (0, 2, 3, 1)))
    wf = wf.at[latent:, :, :, cz:].set(jnp.transpose(wc, (0, 2, 3, 1)))
    wf = wf.reshape(Kd, Np).astype(jnp.bfloat16)
    bias = jnp.tile(jnp.concatenate([bz, bc]).astype(jnp.float32), S * S).reshape(1, Np)
    mask = jnp.tile(jnp.concatenate([jnp.ones((cz,), jnp.float32),
                                     jnp.zeros((1,), jnp.float32)]), S * S).reshape(1, Np)

    B_pad = _round_up(B, SUBLANE)
    a = jnp.concatenate([z, emb], axis=1).astype(jnp.bfloat16)
    if B_pad > B:
        a = jnp.pad(a, ((0, B_pad - B), (0, 0)))

    out = pl.pallas_call(
        _proj_kernel,
        out_shape=jax.ShapeDtypeStruct((B_pad, Np), jnp.bfloat16),
        grid=(1,),
        in_specs=[pl.BlockSpec((B_pad, Kd), lambda i: (0, 0)),
                  pl.BlockSpec((Kd, Np), lambda i: (0, 0)),
                  pl.BlockSpec((1, Np), lambda i: (0, 0)),
                  pl.BlockSpec((1, Np), lambda i: (0, 0))],
        out_specs=pl.BlockSpec((B_pad, Np), lambda i: (0, 0)),
        compiler_params=pltpu.CompilerParams(vmem_limit_bytes=VMEM_LIMIT),
        cost_estimate=pl.CostEstimate(
            flops=int(2 * B_pad * Kd * Np), transcendentals=0,
            bytes_accessed=int(B_pad * Kd * 2 + Kd * Np * 2 + 2 * Np * 4 + B_pad * Np * 2)),
    )(a, wf, bias, mask)
    return out[:B].reshape(B, S, S, Ctot)


def conv_up_bn_leaky(h, w_pt, gamma, beta):
    """ConvTranspose2d(k=4,s=2,p=1,bias=False) + BatchNorm2d(train stats) + LeakyReLU(0.2)."""
    B, H, W, Cin = h.shape
    Cout = w_pt.shape[1]
    M, K = B * H * W, 4 * Cin
    Np = _round_up(Cout, LANE)
    tm, M_pad = _choose_m_tiling(M, K, Np, y_bytes=2)

    A = _parity_patches(h)
    if M_pad > M:
        A = jnp.pad(A, ((0, 0), (0, M_pad - M), (0, 0)))
    Wp = _parity_weights(w_pt, Np)

    y, stats = _conv_pass1_bn(A, Wp, tm)

    # Exact training-mode batch statistics over all B*Ho*Wo rows.  Zero M/N padding
    # contributes exactly 0 to both sums because these layers have bias=False.
    cnt = jnp.float32(4 * M)
    total = jnp.sum(stats, axis=(0, 1))                         # (2, Np)
    mean = total[0] / cnt
    var = jnp.maximum(total[1] / cnt - mean * mean, 0.0)
    g = jnp.pad(gamma.astype(jnp.float32), (0, Np - Cout), constant_values=1.0)
    b = jnp.pad(beta.astype(jnp.float32), (0, Np - Cout))
    scale = g * jax.lax.rsqrt(var + BN_EPS)
    shift = b - mean * scale

    out = _bn_leaky_apply(y, scale.reshape(1, Np), shift.reshape(1, Np), tm)
    return _reassemble(out[:, :M, :Cout], B, H, W, Cout)        # bf16 NHWC


def conv_up_tanh(h, w_pt, bias):
    """ConvTranspose2d(k=4,s=2,p=1,bias=True) + Tanh (last conv + final_layer)."""
    B, H, W, Cin = h.shape
    Cout = w_pt.shape[1]
    M, K = B * H * W, 4 * Cin
    Np = _round_up(Cout, LANE)
    tm, M_pad = _choose_m_tiling(M, K, Np, y_bytes=4)

    A = _parity_patches(h)
    if M_pad > M:
        A = jnp.pad(A, ((0, 0), (0, M_pad - M), (0, 0)))
    Wp = _parity_weights(w_pt, Np)
    b = jnp.pad(bias.astype(jnp.float32), (0, Np - Cout)).reshape(1, Np)

    y = _conv_pass1_tanh(A, Wp, b, tm)
    return _reassemble(y[:, :M, :Cout], B, H, W, Cout)          # f32 NHWC


# ------------------------------- Generator ----------------------------------- #

def init_params(key, *, latent_size, n_gf, levels, n_c, n_disc, emb_dim, init_size):
    """Deterministic synthetic init (DCGAN-style N(0, 0.02) weights, BN gamma ~ N(1, 0.02))."""
    ks = jax.random.split(key, 4 + levels)
    s = 0.02
    cz = n_gf * 2 ** levels - 1
    params = {
        "emb_table": jax.random.normal(ks[0], (n_disc, emb_dim), jnp.float32),
        "wc": s * jax.random.normal(ks[1], (emb_dim, 1, init_size, init_size), jnp.float32),
        "bc": jnp.zeros((1,), jnp.float32),
        "wz": s * jax.random.normal(ks[2], (latent_size, cz, init_size, init_size), jnp.float32),
        "bz": jnp.zeros((cz,), jnp.float32),
        "main": [],
    }
    for li in range(levels):
        c_in = n_gf * 2 ** (levels - li)
        last = li == levels - 1
        c_out = n_c if last else n_gf * 2 ** (levels - li - 1)
        kw, kb = jax.random.split(ks[4 + li])
        params["main"].append({
            "w": s * jax.random.normal(kw, (c_in, c_out, 4, 4), jnp.float32),
            # bias only on the last conv (bias=True); zeros otherwise (bias=False)
            "b": (s * jax.random.normal(kb, (c_out,), jnp.float32)
                  if last else jnp.zeros((c_out,), jnp.float32)),
            "g": 1.0 + s * jax.random.normal(kb, (c_out,), jnp.float32),
            "beta": jnp.zeros((c_out,), jnp.float32),
        })
    return params


def generator_forward(params, x, *, latent_size, n_disc, levels):
    z = x[:, :latent_size]                                      # (B, latent)
    c_logits = x[:, latent_size:latent_size + n_disc]           # (B, n_disc)
    cls = jnp.argmax(c_logits, axis=1)                          # argmax(dim=1)
    emb = jnp.take(params["emb_table"], cls, axis=0)            # nn.Embedding lookup (glue gather)

    # emb_z + emb_c fused into a single Pallas matmul; result is the NHWC channel concat.
    h = fused_projection(z, emb, params["wz"], params["bz"], params["wc"], params["bc"])

    for li in range(levels):
        layer = params["main"][li]
        if li == levels - 1:
            h = conv_up_tanh(h, layer["w"], layer["b"])         # Tanh fused in-kernel
        else:
            h = conv_up_bn_leaky(h, layer["w"], layer["g"], layer["beta"])
    return jnp.transpose(h, (0, 3, 1, 2)).astype(jnp.float32)   # NCHW, matching PyTorch


# --------------------------------- main --------------------------------------- #

if __name__ == "__main__":
    # Small, self-consistent config. The PyTorch default n_disc=0 makes the module
    # degenerate (Embedding(0, ...) + argmax over an empty slice), so we use n_disc=4.
    img_size, latent_size, n_gf, levels, n_c, n_disc, emb_dim = 16, 32, 8, 2, 3, 4, 16
    init_size = img_size // 2 ** levels
    B = 2

    key = jax.random.PRNGKey(0)
    pkey, xkey = jax.random.split(key)
    params = init_params(
        pkey, latent_size=latent_size, n_gf=n_gf, levels=levels,
        n_c=n_c, n_disc=n_disc, emb_dim=emb_dim, init_size=init_size,
    )
    # input layout matches PyTorch: x = [latent | class logits (n_disc)]
    x = jax.random.normal(xkey, (B, latent_size + n_disc), jnp.float32)

    fwd = jax.jit(functools.partial(
        generator_forward, latent_size=latent_size, n_disc=n_disc, levels=levels))
    out = jax.block_until_ready(fwd(params, x))

    assert out.shape == (B, n_c, img_size, img_size), out.shape
    assert out.dtype == jnp.float32
    assert bool(jnp.all(jnp.isfinite(out)))
    print("KERNEL_OK")
</pallas_src>

<mosaic_0001>
module attributes {stable_mosaic.version = 11 : i64} {
  func.func @_proj_kernel(%arg0: i32, %arg1: memref<8x48xbf16, #tpu.memory_space<vmem>>, %arg2: memref<48x512xbf16, #tpu.memory_space<vmem>>, %arg3: memref<1x512xf32, #tpu.memory_space<vmem>>, %arg4: memref<1x512xf32, #tpu.memory_space<vmem>>, %arg5: memref<8x512xbf16, #tpu.memory_space<vmem>>) attributes {dimension_semantics = [#tpu.dimension_semantics<arbitrary>], iteration_bounds = array<i64: 1>, scalar_prefetch = 0 : i64, scratch_operands = 0 : i64, tpu.core_type = #tpu.core_type<tc>, window_params = [{pipeline_mode = #tpu.pipeline_mode<synchronous>, transform_indices = @transform_0, window_bounds = array<i64: 8, 48>}, {pipeline_mode = #tpu.pipeline_mode<synchronous>, transform_indices = @transform_1, window_bounds = array<i64: 48, 512>}, {pipeline_mode = #tpu.pipeline_mode<synchronous>, transform_indices = @transform_2, window_bounds = array<i64: 1, 512>}, {pipeline_mode = #tpu.pipeline_mode<synchronous>, transform_indices = @transform_3, window_bounds = array<i64: 1, 512>}, {pipeline_mode = #tpu.pipeline_mode<synchronous>, transform_indices = @transform_4, window_bounds = array<i64: 8, 512>}]} {
    %c0 = arith.constant 0 : index
    %c0_0 = arith.constant 0 : index
    %0 = vector.load %arg1[%c0, %c0_0] : memref<8x48xbf16, #tpu.memory_space<vmem>>, vector<8x48xbf16>
    %c0_1 = arith.constant 0 : index
    %c0_2 = arith.constant 0 : index
    %1 = vector.load %arg2[%c0_1, %c0_2] : memref<48x512xbf16, #tpu.memory_space<vmem>>, vector<48x512xbf16>
    %cst = arith.constant dense<0.000000e+00> : vector<8x512xf32>
    %2 = tpu.matmul %0, %1, %cst {dimension_numbers = #tpu.dot_dimension_numbers<[1], [0], [0], [1], [0, 0, 1, 1], [], []>} : vector<8x48xbf16>, vector<48x512xbf16>, vector<8x512xf32> -> vector<8x512xf32>
    %c0_3 = arith.constant 0 : index
    %c0_4 = arith.constant 0 : index
    %3 = vector.load %arg3[%c0_3, %c0_4] : memref<1x512xf32, #tpu.memory_space<vmem>>, vector<1x512xf32>
    %4 = vector.broadcast %3 : vector<1x512xf32> to vector<8x512xf32>
    %5 = arith.addf %2, %4 : vector<8x512xf32>
    %cst_5 = arith.constant 0.000000e+00 : f32
    %6 = vector.broadcast %cst_5 : f32 to vector<8x512xf32>
    %7 = arith.cmpf oge, %5, %6 : vector<8x512xf32>
    %cst_6 = arith.constant 2.000000e-01 : f32
    %8 = vector.broadcast %cst_6 : f32 to vector<8x512xf32>
    %9 = arith.mulf %8, %5 : vector<8x512xf32>
    %10 = arith.select %7, %5, %9 : vector<8x512xi1>, vector<8x512xf32>
    %c0_7 = arith.constant 0 : index
    %c0_8 = arith.constant 0 : index
    %11 = vector.load %arg4[%c0_7, %c0_8] : memref<1x512xf32, #tpu.memory_space<vmem>>, vector<1x512xf32>
    %cst_9 = arith.constant 0.000000e+00 : f32
    %12 = vector.broadcast %cst_9 : f32 to vector<1x512xf32>
    %13 = arith.cmpf ogt, %11, %12 : vector<1x512xf32>
    %14 = vector.shape_cast %13 : vector<1x512xi1> to vector<1x512xi1>
    %15 = vector.broadcast %14 : vector<1x512xi1> to vector<8x512xi1>
    %16 = arith.select %15, %10, %5 : vector<8x512xi1>, vector<8x512xf32>
    %17 = arith.truncf %16 : vector<8x512xf32> to vector<8x512xbf16>
    %c0_10 = arith.constant 0 : index
    %c0_11 = arith.constant 0 : index
    %18 = vector.load %arg5[%c0_10, %c0_11] : memref<8x512xbf16, #tpu.memory_space<vmem>>, vector<8x512xbf16>
    tpu.vector_store %arg5[%c0_10, %c0_11], %17 {strides = array<i32>} : memref<8x512xbf16, #tpu.memory_space<vmem>>, vector<8x512xbf16>,
    return
  }
  func.func @transform_0(%arg0: i32) -> (i32, i32) {
    %c0_i32 = arith.constant 0 : i32
    %c0_i32_0 = arith.constant 0 : i32
    %c0_i32_1 = arith.constant 0 : i32
    return %c0_i32, %c0_i32_0 : i32, i32
  }
  func.func @transform_1(%arg0: i32) -> (i32, i32) {
    %c0_i32 = arith.constant 0 : i32
    %c0_i32_0 = arith.constant 0 : i32
    %c0_i32_1 = arith.constant 0 : i32
    return %c0_i32, %c0_i32_0 : i32, i32
  }
  func.func @transform_2(%arg0: i32) -> (i32, i32) {
    %c0_i32 = arith.constant 0 : i32
    %c0_i32_0 = arith.constant 0 : i32
    %c0_i32_1 = arith.constant 0 : i32
    return %c0_i32, %c0_i32_0 : i32, i32
  }
  func.func @transform_3(%arg0: i32) -> (i32, i32) {
    %c0_i32 = arith.constant 0 : i32
    %c0_i32_0 = arith.constant 0 : i32
    %c0_i32_1 = arith.constant 0 : i32
    return %c0_i32, %c0_i32_0 : i32, i32
  }
  func.func @transform_4(%arg0: i32) -> (i32, i32) {
    %c0_i32 = arith.constant 0 : i32
    %c0_i32_0 = arith.constant 0 : i32
    %c0_i32_1 = arith.constant 0 : i32
    return %c0_i32, %c0_i32_0 : i32, i32
  }
}

module attributes {stable_mosaic.version = 11 : i64} {
  func.func @_conv_stats_kernel(%arg0: i32, %arg1: i32, %arg2: memref<1x32x128xbf16, #tpu.memory_space<vmem>>, %arg3: memref<1x128x128xbf16, #tpu.memory_space<vmem>>, %arg4: memref<1x32x128xbf16, #tpu.memory_space<vmem>>, %arg5: memref<1x1x2x128xf32, #tpu.memory_space<vmem>>) attributes {dimension_semantics = [#tpu.dimension_semantics<parallel>, #tpu.dimension_semantics<parallel>], iteration_bounds = array<i64: 4, 1>, scalar_prefetch = 0 : i64, scratch_operands = 0 : i64, tpu.core_type = #tpu.core_type<tc>, window_params = [{transform_indices = @transform_0, window_bounds = array<i64: 1, 32, 128>}, {transform_indices = @transform_1, window_bounds = array<i64: 1, 128, 128>}, {transform_indices = @transform_2, window_bounds = array<i64: 1, 32, 128>}, {transform_indices = @transform_3, window_bounds = array<i64: 1, 1, 2, 128>}]} {
    %c0 = arith.constant 0 : index
    %c0_0 = arith.constant 0 : index
    %c0_1 = arith.constant 0 : index
    %0 = vector.load %arg2[%c0, %c0_0, %c0_1] : memref<1x32x128xbf16, #tpu.memory_space<vmem>>, vector<1x32x128xbf16>
    %1 = vector.shape_cast %0 : vector<1x32x128xbf16> to vector<32x128xbf16>
    %c0_2 = arith.constant 0 : index
    %c0_3 = arith.constant 0 : index
    %c0_4 = arith.constant 0 : index
    %2 = vector.load %arg3[%c0_2, %c0_3, %c0_4] : memref<1x128x128xbf16, #tpu.memory_space<vmem>>, vector<1x128x128xbf16>
    %3 = vector.shape_cast %2 : vector<1x128x128xbf16> to vector<128x128xbf16>
    %cst = arith.constant dense<0.000000e+00> : vector<32x128xf32>
    %4 = tpu.matmul %1, %3, %cst {dimension_numbers = #tpu.dot_dimension_numbers<[1], [0], [0], [1], [0, 0, 1, 1], [], []>} : vector<32x128xbf16>, vector<128x128xbf16>, vector<32x128xf32> -> vector<32x128xf32>
    %5 = arith.truncf %4 : vector<32x128xf32> to vector<32x128xbf16>
    %c0_5 = arith.constant 0 : index
    %c0_6 = arith.constant 0 : index
    %c0_7 = arith.constant 0 : index
    %6 = vector.load %arg4[%c0_5, %c0_6, %c0_7] : memref<1x32x128xbf16, #tpu.memory_space<vmem>>, vector<1x32x128xbf16>
    %7 = vector.shape_cast %6 : vector<1x32x128xbf16> to vector<32x128xbf16>
    %8 = vector.shape_cast %5 : vector<32x128xbf16> to vector<1x32x128xbf16>
    tpu.vector_store %arg4[%c0_5, %c0_6, %c0_7], %8 {strides = array<i32>} : memref<1x32x128xbf16, #tpu.memory_space<vmem>>, vector<1x32x128xbf16>,
    %cst_8 = arith.constant dense<0.000000e+00> : vector<128xf32>
    %9 = vector.multi_reduction <add>, %4, %cst_8 [0] : vector<32x128xf32> to vector<128xf32>
    %10 = vector.shape_cast %9 : vector<128xf32> to vector<1x128xf32>
    %11 = arith.mulf %4, %4 : vector<32x128xf32>
    %cst_9 = arith.constant dense<0.000000e+00> : vector<128xf32>
    %12 = vector.multi_reduction <add>, %11, %cst_9 [0] : vector<32x128xf32> to vector<128xf32>
    %13 = vector.shape_cast %12 : vector<128xf32> to vector<1x128xf32>
    %14 = tpu.concatenate %10, %13 in 0 : vector<1x128xf32>, vector<1x128xf32> -> vector<2x128xf32>
    %c0_10 = arith.constant 0 : index
    %c0_11 = arith.constant 0 : index
    %c0_12 = arith.constant 0 : index
    %c0_13 = arith.constant 0 : index
    %15 = vector.load %arg5[%c0_10, %c0_11, %c0_12, %c0_13] : memref<1x1x2x128xf32, #tpu.memory_space<vmem>>, vector<1x1x2x128xf32>
    %16 = vector.shape_cast %15 : vector<1x1x2x128xf32> to vector<2x128xf32>
    %17 = vector.shape_cast %14 : vector<2x128xf32> to vector<1x1x2x128xf32>
    tpu.vector_store %arg5[%c0_10, %c0_11, %c0_12, %c0_13], %17 {strides = array<i32>} : memref<1x1x2x128xf32, #tpu.memory_space<vmem>>, vector<1x1x2x128xf32>,
    return
  }
  func.func @transform_0(%arg0: i32, %arg1: i32) -> (i32, i32, i32) {
    %c0_i32 = arith.constant 0 : i32
    %c0_i32_0 = arith.constant 0 : i32
    return %arg0, %arg1, %c0_i32 : i32, i32, i32
  }
  func.func @transform_1(%arg0: i32, %arg1: i32) -> (i32, i32, i32) {
    %c0_i32 = arith.constant 0 : i32
    %c0_i32_0 = arith.constant 0 : i32
    %c0_i32_1 = arith.constant 0 : i32
    return %arg0, %c0_i32, %c0_i32_0 : i32, i32, i32
  }
  func.func @transform_2(%arg0: i32, %arg1: i32) -> (i32, i32, i32) {
    %c0_i32 = arith.constant 0 : i32
    %c0_i32_0 = arith.constant 0 : i32
    return %arg0, %arg1, %c0_i32 : i32, i32, i32
  }
  func.func @transform_3(%arg0: i32, %arg1: i32) -> (i32, i32, i32, i32) {
    %c0_i32 = arith.constant 0 : i32
    %c0_i32_0 = arith.constant 0 : i32
    %c0_i32_1 = arith.constant 0 : i32
    return %arg0, %arg1, %c0_i32, %c0_i32_0 : i32, i32, i32, i32
  }
}

module attributes {stable_mosaic.version = 11 : i64} {
  func.func @_bn_leaky_kernel(%arg0: i32, %arg1: i32, %arg2: memref<1x32x128xbf16, #tpu.memory_space<vmem>>, %arg3: memref<1x128xf32, #tpu.memory_space<vmem>>, %arg4: memref<1x128xf32, #tpu.memory_space<vmem>>, %arg5: memref<1x32x128xbf16, #tpu.memory_space<vmem>>) attributes {dimension_semantics = [#tpu.dimension_semantics<parallel>, #tpu.dimension_semantics<parallel>], iteration_bounds = array<i64: 4, 1>, scalar_prefetch = 0 : i64, scratch_operands = 0 : i64, tpu.core_type = #tpu.core_type<tc>, window_params = [{transform_indices = @transform_0, window_bounds = array<i64: 1, 32, 128>}, {pipeline_mode = #tpu.pipeline_mode<synchronous>, transform_indices = @transform_1, window_bounds = array<i64: 1, 128>}, {pipeline_mode = #tpu.pipeline_mode<synchronous>, transform_indices = @transform_2, window_bounds = array<i64: 1, 128>}, {transform_indices = @transform_3, window_bounds = array<i64: 1, 32, 128>}]} {
    %c0 = arith.constant 0 : index
    %c0_0 = arith.constant 0 : index
    %c0_1 = arith.constant 0 : index
    %0 = vector.load %arg2[%c0, %c0_0, %c0_1] : memref<1x32x128xbf16, #tpu.memory_space<vmem>>, vector<1x32x128xbf16>
    %1 = vector.shape_cast %0 : vector<1x32x128xbf16> to vector<32x128xbf16>
    %2 = arith.extf %1 : vector<32x128xbf16> to vector<32x128xf32>
    %c0_2 = arith.constant 0 : index
    %c0_3 = arith.constant 0 : index
    %3 = vector.load %arg3[%c0_2, %c0_3] : memref<1x128xf32, #tpu.memory_space<vmem>>, vector<1x128xf32>
    %4 = vector.broadcast %3 : vector<1x128xf32> to vector<32x128xf32>
    %5 = arith.mulf %2, %4 : vector<32x128xf32>
    %c0_4 = arith.constant 0 : index
    %c0_5 = arith.constant 0 : index
    %6 = vector.load %arg4[%c0_4, %c0_5] : memref<1x128xf32, #tpu.memory_space<vmem>>, vector<1x128xf32>
    %7 = vector.broadcast %6 : vector<1x128xf32> to vector<32x128xf32>
    %8 = arith.addf %5, %7 : vector<32x128xf32>
    %cst = arith.constant 0.000000e+00 : f32
    %9 = vector.broadcast %cst : f32 to vector<32x128xf32>
    %10 = arith.cmpf oge, %8, %9 : vector<32x128xf32>
    %cst_6 = arith.constant 2.000000e-01 : f32
    %11 = vector.broadcast %cst_6 : f32 to vector<32x128xf32>
    %12 = arith.mulf %11, %8 : vector<32x128xf32>
    %13 = arith.select %10, %8, %12 : vector<32x128xi1>, vector<32x128xf32>
    %14 = arith.truncf %13 : vector<32x128xf32> to vector<32x128xbf16>
    %c0_7 = arith.constant 0 : index
    %c0_8 = arith.constant 0 : index
    %c0_9 = arith.constant 0 : index
    %15 = vector.load %arg5[%c0_7, %c0_8, %c0_9] : memref<1x32x128xbf16, #tpu.memory_space<vmem>>, vector<1x32x128xbf16>
    %16 = vector.shape_cast %15 : vector<1x32x128xbf16> to vector<32x128xbf16>
    %17 = vector.shape_cast %14 : vector<32x128xbf16> to vector<1x32x128xbf16>
    tpu.vector_store %arg5[%c0_7, %c0_8, %c0_9], %17 {strides = array<i32>} : memref<1x32x128xbf16, #tpu.memory_space<vmem>>, vector<1x32x128xbf16>,
    return
  }
  func.func @transform_0(%arg0: i32, %arg1: i32) -> (i32, i32, i32) {
    %c0_i32 = arith.constant 0 : i32
    %c0_i32_0 = arith.constant 0 : i32
    return %arg0, %arg1, %c0_i32 : i32, i32, i32
  }
  func.func @transform_1(%arg0: i32, %arg1: i32) -> (i32, i32) {
    %c0_i32 = arith.constant 0 : i32
    %c0_i32_0 = arith.constant 0 : i32
    %c0_i32_1 = arith.constant 0 : i32
    return %c0_i32, %c0_i32_0 : i32, i32
  }
  func.func @transform_2(%arg0: i32, %arg1: i32) -> (i32, i32) {
    %c0_i32 = arith.constant 0 : i32
    %c0_i32_0 = arith.constant 0 : i32
    %c0_i32_1 = arith.constant 0 : i32
    return %c0_i32, %c0_i32_0 : i32, i32
  }
  func.func @transform_3(%arg0: i32, %arg1: i32) -> (i32, i32, i32) {
    %c0_i32 = arith.constant 0 : i32
    %c0_i32_0 = arith.constant 0 : i32
    return %arg0, %arg1, %c0_i32 : i32, i32, i32
  }
}

module attributes {stable_mosaic.version = 11 : i64} {
  func.func @_conv_bias_tanh_kernel(%arg0: i32, %arg1: i32, %arg2: memref<1x128x64xbf16, #tpu.memory_space<vmem>>, %arg3: memref<1x64x128xbf16, #tpu.memory_space<vmem>>, %arg4: memref<1x128xf32, #tpu.memory_space<vmem>>, %arg5: memref<1x128x128xf32, #tpu.memory_space<vmem>>) attributes {dimension_semantics = [#tpu.dimension_semantics<parallel>, #tpu.dimension_semantics<parallel>], iteration_bounds = array<i64: 4, 1>, scalar_prefetch = 0 : i64, scratch_operands = 0 : i64, tpu.core_type = #tpu.core_type<tc>, window_params = [{transform_indices = @transform_0, window_bounds = array<i64: 1, 128, 64>}, {transform_indices = @transform_1, window_bounds = array<i64: 1, 64, 128>}, {pipeline_mode = #tpu.pipeline_mode<synchronous>, transform_indices = @transform_2, window_bounds = array<i64: 1, 128>}, {transform_indices = @transform_3, window_bounds = array<i64: 1, 128, 128>}]} {
    %c0 = arith.constant 0 : index
    %c0_0 = arith.constant 0 : index
    %c0_1 = arith.constant 0 : index
    %0 = vector.load %arg2[%c0, %c0_0, %c0_1] : memref<1x128x64xbf16, #tpu.memory_space<vmem>>, vector<1x128x64xbf16>
    %1 = vector.shape_cast %0 : vector<1x128x64xbf16> to vector<128x64xbf16>
    %c0_2 = arith.constant 0 : index
    %c0_3 = arith.constant 0 : index
    %c0_4 = arith.constant 0 : index
    %2 = vector.load %arg3[%c0_2, %c0_3, %c0_4] : memref<1x64x128xbf16, #tpu.memory_space<vmem>>, vector<1x64x128xbf16>
    %3 = vector.shape_cast %2 : vector<1x64x128xbf16> to vector<64x128xbf16>
    %cst = arith.constant dense<0.000000e+00> : vector<128x128xf32>
    %4 = tpu.matmul %1, %3, %cst {dimension_numbers = #tpu.dot_dimension_numbers<[1], [0], [0], [1], [0, 0, 1, 1], [], []>} : vector<128x64xbf16>, vector<64x128xbf16>, vector<128x128xf32> -> vector<128x128xf32>
    %c0_5 = arith.constant 0 : index
    %c0_6 = arith.constant 0 : index
    %5 = vector.load %arg4[%c0_5, %c0_6] : memref<1x128xf32, #tpu.memory_space<vmem>>, vector<1x128xf32>
    %6 = vector.broadcast %5 : vector<1x128xf32> to vector<128x128xf32>
    %7 = arith.addf %4, %6 : vector<128x128xf32>
    %8 = math.tanh %7 : vector<128x128xf32>
    %c0_7 = arith.constant 0 : index
    %c0_8 = arith.constant 0 : index
    %c0_9 = arith.constant 0 : index
    %9 = vector.load %arg5[%c0_7, %c0_8, %c0_9] : memref<1x128x128xf32, #tpu.memory_space<vmem>>, vector<1x128x128xf32>
    %10 = vector.shape_cast %9 : vector<1x128x128xf32> to vector<128x128xf32>
    %11 = vector.shape_cast %8 : vector<128x128xf32> to vector<1x128x128xf32>
    tpu.vector_store %arg5[%c0_7, %c0_8, %c0_9], %11 {strides = array<i32>} : memref<1x128x128xf32, #tpu.memory_space<vmem>>, vector<1x128x128xf32>,
    return
  }
  func.func @transform_0(%arg0: i32, %arg1: i32) -> (i32, i32, i32) {
    %c0_i32 = arith.constant 0 : i32
    %c0_i32_0 = arith.constant 0 : i32
    return %arg0, %arg1, %c0_i32 : i32, i32, i32
  }
  func.func @transform_1(%arg0: i32, %arg1: i32) -> (i32, i32, i32) {
    %c0_i32 = arith.constant 0 : i32
    %c0_i32_0 = arith.constant 0 : i32
    %c0_i32_1 = arith.constant 0 : i32
    return %arg0, %c0_i32, %c0_i32_0 : i32, i32, i32
  }
  func.func @transform_2(%arg0: i32, %arg1: i32) -> (i32, i32) {
    %c0_i32 = arith.constant 0 : i32
    %c0_i32_0 = arith.constant 0 : i32
    %c0_i32_1 = arith.constant 0 : i32
    return %c0_i32, %c0_i32_0 : i32, i32
  }
  func.func @transform_3(%arg0: i32, %arg1: i32) -> (i32, i32, i32) {
    %c0_i32 = arith.constant 0 : i32
    %c0_i32_0 = arith.constant 0 : i32
    return %arg0, %arg1, %c0_i32 : i32, i32, i32
  }
}

</mosaic_0001>

<bundles_post_ra>
// kernel: tile.12
= control target key start
LH: loop header
LB: loop body
LE: loop exit
PB: predicated region body
PF: predicated region fallthrough
CT: control target
= control target key end

     0   :  { %s28_s0 = inlined_call_operand.vmem [shape: f32[32], index: 0, kind: input, shape index: {}]   ;;  %s29_s1 = inlined_call_operand.vmem [shape: f32[16,32], index: 1, kind: output, shape index: {}]  }
   0x1   :  { %v4_v0 = vld [vmem:[%s28_s0] ss:$0 sm:$0xff] }
   0x2   :  { %5 = vst [vmem:[%s29_s1] sm:$0xff] %v4_v0  ;;  %8 = vst [vmem:[%s29_s1 + $0x8] sm:$0xff] %v4_v0 }

// kernel: tile.13
= control target key start
LH: loop header
LB: loop body
LE: loop exit
PB: predicated region body
PF: predicated region fallthrough
CT: control target
= control target key end

     0   :  { %s57_s8 = smov 96   ;;  %vm3_vm0 = vcmask 261120   ;;  %s59_s15 = smov 64   ;;  %vm9_vm1 = vcmask 1048320   ;;  %vm15_vm2 = vcmask 785920   ;;  %vm21_vm3 = vcmask 523520   ;;  %s94_s0 = inlined_call_operand.vmem [shape: f32[16,32], index: 0, kind: input, shape index: {}]   ;;  %s95_s1 = inlined_call_operand.vmem [shape: f32[1,512], index: 1, kind: output, shape index: {}]  }
   0x1   :  { %v48_v0 = vld [vmem:[%s94_s0 + $0x3] ss:$4 sm:$0xf]   ;;  %v49_v1 = vld [vmem:[%s94_s0 + $0x2] ss:$4 sm:$0xf]  }
   0x2   :  { %7 = vrot.lane.b32.xlu0 %v48_v0, %s57_s8  ;;  %v50_v2 = vld [vmem:[%s94_s0 + $0x1] ss:$4 sm:$0xf]   ;;  %v2_v3 = vld [vmem:[%s94_s0] ss:$4 sm:$0xf]  }
   0x3   :  { %s58_s0 = smov 32   ;;  %4 = vst.msk [vmem:[#allocation0] ss:$8 sm:$0xf] %vm3_vm0, %v2_v3  }
   0x4   :  { %19 = vrot.lane.b32.xlu1 %v50_v2, %s58_s0 }
   0x6   :  { %13 = vrot.lane.b32.xlu0 %v49_v1, %s59_s15 }
  0x74   :  { %v8_v4 = vpop.permute.xlu0 %7  }
  0x75   :  { %10 = vst.msk [vmem:[#allocation0] ss:$8 sm:$0xf] %vm9_vm1, %v8_v4  }
  0x76   :  { %v20_v5 = vpop.permute.xlu1 %19  }
  0x78   :  { %v14_v6 = vpop.permute.xlu0 %13  }
  0x79   :  { %16 = vst.msk [vmem:[#allocation0] ss:$8 sm:$0xf] %vm15_vm2, %v14_v6  }
  0x7a   :  { %22 = vst.msk [vmem:[#allocation0] ss:$8 sm:$0xf] %vm21_vm3, %v20_v5  }
  0x81   :  { %v26_v7 = vld [vmem:[#allocation0] sm:$0x1]  ;;  %v30_v8 = vld [vmem:[#allocation0 + $0x8] sm:$0x1]  ;;  %v35_v9 = vld [vmem:[#allocation0 + $0x10] sm:$0x1] }
  0x82   :  { %28 = vst [vmem:[%s95_s1] sm:$0x1] %v26_v7  ;;  %51 = vst [vmem:[%s95_s1 + $0x1] sm:$0x1] %v30_v8  ;;  %v41_v10 = vld [vmem:[#allocation0 + $0x18] sm:$0x1] }
  0x83   :  { %52 = vst [vmem:[%s95_s1 + $0x2] sm:$0x1] %v35_v9  ;;  %53 = vst [vmem:[%s95_s1 + $0x3] sm:$0x1] %v41_v10 }

// kernel: generator_forward.6
= control target key start
LH: loop header
LB: loop body
LE: loop exit
PB: predicated region body
PF: predicated region fallthrough
CT: control target
= control target key end

     0   :  { %s470_s12 = smov 0   ;;  %s472_s13 = smov 0   ;;  %s509_s0 = inlined_call_operand.vmem [shape: bf16[4,32,128], index: 0, kind: input, shape index: {}]   ;;  %s510_s1 = inlined_call_operand.vmem [shape: f32[1,128], index: 1, kind: input, shape index: {}]   ;;  %s511_s2 = inlined_call_operand.vmem [shape: f32[1,128], index: 2, kind: input, shape index: {}]   ;;  %s512_s3 = inlined_call_operand.vmem [shape: bf16[4,32,128], index: 3, kind: output, shape index: {}]  }
   0x1   :  { %s474_s14 = smov 0  }
   0x2 LB: > { %s25_s15 = sadd.s32 1, %s444_s13  ;;  %p363_p0 = scmp.ge.s32.totalorder %s448_s14, 1  ;;  %s448_s14 = sphi %s474_s14, %s13_s14   ;;  %s444_s13 = sphi %s472_s13, %s514_s13   ;;  %s440_s12 = sphi %s470_s12, %s513_s12  }
   0x3   : > { %p27_p1 = scmp.ge.s32.totalorder %s25_s15, 4  ;;  %p158_p2 = scmp.lt.s32.totalorder %s448_s14, 5 }
   0x5   : > { %s516_s15 = smov (%p27_p1, %s25_s15), 0  ;;  %p159_p3 = pnand %p363_p0, %p158_p2 }
   0x6   : > { %p191_p4 = scmp.lt.s32.totalorder (!%p159_p3), %s440_s12, 3  ;;  %v368_v2 = vld [vmem:[%s510_s1] ss:$0 sm:$0xff] (!%p159_p3) }
   0x7   : > { %162 = sbr.rel (%p159_p3) target bundleno = 31 (0x1f), region = 32  ;;  %v369_v7 = vld [vmem:[%s511_s2] ss:$0 sm:$0xff] (!%p159_p3) }
   0xe   : > { %s518_s12 = smov (!%p191_p4, %s440_s12), 3 }
   0xf   : > { %s376_s16 = sshll.u32 %s518_s12, 4 }
  0x10   : > { %s198_s19 = scalar_lea.vmem %s509_s0, %s376_s16  ;;  %s208_s26 = scalar_lea.vmem %s512_s3, %s376_s16 }
  0x11   : > { %v383_v0 = vld [vmem:[%s198_s19] sm:$0xff]   ;;  %v400_v1 = vld [vmem:[%s198_s19 + $0x8] sm:$0xff]  }
  0x12   : > { %v384_v3 = vunpack.c.l.bf16 %v383_v0  ;;  %v385_v4 = vunpack.c.h.bf16 %v383_v0  ;;  %v388_v5 = vunpack.c.l.bf16 %v400_v1  ;;  %v389_v6 = vunpack.c.h.bf16 %v400_v1 }
  0x14   : > { %v225_v8 = vmul.f32 %v384_v3, %v368_v2  ;;  %v226_v9 = vmul.f32 %v385_v4, %v368_v2  ;;  %v227_v10 = vmul.f32 %v388_v5, %v368_v2  ;;  %v228_v11 = vmul.f32 %v389_v6, %v368_v2 }
  0x16   : > { %v236_v12 = vadd.f32 %v369_v7, %v225_v8  ;;  %v237_v13 = vadd.f32 %v369_v7, %v226_v9  ;;  %v238_v14 = vadd.f32 %v369_v7, %v227_v10  ;;  %v239_v15 = vadd.f32 %v369_v7, %v228_v11 }
  0x18   : > { %vm240_vm0 = vcmp.ge.f32.partialorder %v236_v12, 0.0  ;;  %vm241_vm1 = vcmp.ge.f32.partialorder %v237_v13, 0.0  ;;  %v244_v16 = vmul.f32 0.2, %v236_v12  ;;  %v245_v17 = vmul.f32 0.2, %v237_v13 }
  0x19   : > { %vm242_vm2 = vcmp.ge.f32.partialorder %v238_v14, 0.0  ;;  %vm243_vm3 = vcmp.ge.f32.partialorder %v239_v15, 0.0  ;;  %v246_v18 = vmul.f32 0.2, %v238_v14  ;;  %v247_v19 = vmul.f32 0.2, %v239_v15 }
  0x1a   : > { %v248_v20 = vsel %vm240_vm0, %v236_v12, %v244_v16  ;;  %v249_v21 = vsel %vm241_vm1, %v237_v13, %v245_v17 }
  0x1b   : > { %v393_v22 = vpack.c.bf16 %v249_v21, %v248_v20  ;;  %v250_v23 = vsel %vm242_vm2, %v238_v14, %v246_v18  ;;  %v251_v24 = vsel %vm243_vm3, %v239_v15, %v247_v19 }
  0x1c   : > { %v398_v25 = vpack.c.bf16 %v251_v24, %v250_v23 }
  0x1d   : > { %394 = vst [vmem:[%s208_s26] sm:$0xff] %v393_v22  }
  0x1e   : > { %401 = vst [vmem:[%s208_s26 + $0x8] sm:$0xff] %v398_v25  }
  0x1f PF: > { %s13_s14 = sadd.s32 1, %s448_s14   ;;  %s513_s12 = smov %s444_s13 }
  0x20   : > { %p10_p5 = scmp.ge.s32.totalorder %s13_s14, 6   ;;  %s514_s13 = smov %s516_s15 }
  0x22   :  { %12 = sbr.rel (!%p10_p5) target bundleno = 2 (0x2), region = 62 }

// kernel: generator_forward.5
= control target key start
LH: loop header
LB: loop body
LE: loop exit
PB: predicated region body
PF: predicated region fallthrough
CT: control target
= control target key end

     0   :  { %s718_s12 = smov 0   ;;  %s720_s13 = smov 0   ;;  %s766_s0 = inlined_call_operand.vmem [shape: bf16[4,32,128], index: 0, kind: input, shape index: {}]   ;;  %s767_s1 = inlined_call_operand.vmem [shape: bf16[4,128,128], index: 1, kind: input, shape index: {}]   ;;  %s768_s2 = inlined_call_operand.vmem [shape: bf16[4,32,128], index: 2, kind: output, shape index: {0}]   ;;  %s769_s3 = inlined_call_operand.vmem [shape: f32[4,1,2,128], index: 3, kind: output, shape index: {1}]  }
   0x1   :  { %s722_s14 = smov 0  }
   0x2 LB: > { %s26_s15 = sadd.s32 1, %s692_s13  ;;  %p568_p0 = scmp.ge.s32.totalorder %s696_s14, 1  ;;  %s696_s14 = sphi %s722_s14, %s14_s14   ;;  %s692_s13 = sphi %s720_s13, %s771_s13   ;;  %s688_s12 = sphi %s718_s12, %s770_s12  }
   0x3   : > { %p28_p1 = scmp.ge.s32.totalorder %s26_s15, 4  ;;  %p173_p2 = scmp.lt.s32.totalorder %s696_s14, 5 }
   0x5   : > { %s773_s15 = smov (%p28_p1, %s26_s15), 0  ;;  %p174_p3 = pnand %p568_p0, %p173_p2 }
   0x6   : > { %p218_p4 = scmp.lt.s32.totalorder (!%p174_p3), %s688_s12, 3  ;;  %vm421_vm0 = vcmask (!%p174_p3), 1040384  }
   0x7   : > { %177 = sbr.rel (%p174_p3) target bundleno = 287 (0x11f), region = 28 }
   0xe   : > { %s775_s12 = smov (!%p218_p4, %s688_s12), 3 }
   0xf   : > { %s593_s16 = sshll.u32 %s775_s12, 6  ;;  %s592_s20 = sshll.u32 %s775_s12, 4 }
  0x10   : > { %s231_s19 = scalar_lea.vmem %s767_s1, %s593_s16  ;;  %s225_s23 = scalar_lea.vmem %s766_s0, %s592_s20 }
  0x11   : > { %v664_v0 = vld [vmem:[%s231_s19] sm:$0xff]   ;;  %v665_v1 = vld [vmem:[%s231_s19 + $0x8] sm:$0xff]   ;;  %v666_v2 = vld [vmem:[%s231_s19 + $0x10] sm:$0xff]   ;;  %s240_s26 = scalar_lea.vmem %s768_s2, %s592_s20  ;;  %s575_s27 = sshll.u32 %s775_s12, 1 }
  0x12   : > { %620 = vmatprep.subr.bf16.mxu0 %v664_v0  ;;  %v667_v3 = vld [vmem:[%s231_s19 + $0x18] sm:$0xff]   ;;  %v672_v4 = vld [vmem:[%s225_s23] sm:$0xff]   ;;  %v669_v6 = vld [vmem:[%s231_s19 + $0x28] sm:$0xff]   ;;  %s248_s30 = scalar_lea.vmem %s769_s3, %s575_s27 }
  0x13   : > { %621 = vmatpush3.bf16.msra.mxu0 %v664_v0  ;;  %636 = vmatprep.mubr.bf16.mxu0 %v672_v4  ;;  %v668_v5 = vld [vmem:[%s231_s19 + $0x20] sm:$0xff]   ;;  %v670_v7 = vld [vmem:[%s231_s19 + $0x30] sm:$0xff]   ;;  %v671_v8 = vld [vmem:[%s231_s19 + $0x38] sm:$0xff]  }
  0x14   : > { %622 = vmatprep.subr.bf16.mxu0 %v665_v1  ;;  %v673_v9 = vld [vmem:[%s225_s23 + $0x8] sm:$0xff]  }
  0x17   : > { %623 = vmatpush3.bf16.msra.mxu0 %v665_v1 }
  0x18   : > { %624 = vmatprep.subr.bf16.mxu0 %v666_v2 }
  0x1b   : > { %625 = vmatpush3.bf16.msra.mxu0 %v666_v2 }
  0x1c   : > { %626 = vmatprep.subr.bf16.mxu0 %v667_v3 }
  0x1f   : > { %627 = vmatpush3.bf16.msra.mxu0 %v667_v3 }
  0x20   : > { %628 = vmatprep.subr.bf16.mxu0 %v668_v5 }
  0x23   : > { %629 = vmatpush3.bf16.msra.mxu0 %v668_v5 }
  0x24   : > { %630 = vmatprep.subr.bf16.mxu0 %v669_v6 }
  0x27   : > { %631 = vmatpush3.bf16.msra.mxu0 %v669_v6 }
  0x28   : > { %632 = vmatprep.subr.bf16.mxu0 %v670_v7 }
  0x2b   : > { %633 = vmatpush3.bf16.msra.mxu0 %v670_v7 }
  0x2c   : > { %634 = vmatprep.subr.bf16.mxu0 %v671_v8 }
  0x2f   : > { %635 = vmatpush3.bf16.msra.mxu0 %v671_v8 }
  0x32   : > { %637 = vmatmul.mubr.bf16.vlgmr.msra.gmra.mrb[0].mxu0 %v673_v9 }
 0x105   : > { %v638_v10 = vpop.f32.mrb[0].mxu0 }
 0x106   : > { %v364_v11 = vpop.f32.mrb[1].mxu0  ;;  %v410_v19 = vmul.f32 %v638_v10, %v638_v10 }
 0x107   : > { %v639_v12 = vpop.f32.mrb[2].mxu0  ;;  %v408_v15 = vmul.f32 %v364_v11, %v364_v11 }
 0x108   : > { %v607_v13 = vpack.c.bf16 %v639_v12, %v638_v10  ;;  %v367_v14 = vpop.f32.mrb[3].mxu0  ;;  %v411_v22 = vmul.f32 %v639_v12, %v639_v12 }
 0x109   : > { %v602_v16 = vpack.c.bf16 %v367_v14, %v364_v11  ;;  %v399_v17 = vadd.f32 %v367_v14, %v364_v11  ;;  %v409_v18 = vmul.f32 %v367_v14, %v367_v14 }
 0x10a   : > { %609 = vst [vmem:[%s240_s26 + $0x8] sm:$0xff] %v607_v13  }
 0x10b   : > { %603 = vst [vmem:[%s240_s26] sm:$0xff] %v602_v16   ;;  %v400_v20 = vadd.f32 %v638_v10, %v399_v17  ;;  %v412_v21 = vadd.f32 %v409_v18, %v408_v15 }
 0x10d   : > { %v401_v23 = vadd.f32 %v639_v12, %v400_v20  ;;  %v413_v24 = vadd.f32 %v412_v21, %v410_v19 }
 0x10f   : > { %v402_v25 = vrot.slane %v401_v23, 4  ;;  %v414_v26 = vadd.f32 %v413_v24, %v411_v22 }
 0x111   : > { %v403_v27 = vadd.f32 %v402_v25, %v401_v23  ;;  %v415_v28 = vrot.slane %v414_v26, 4 }
 0x113   : > { %v404_v29 = vrot.slane %v403_v27, 2  ;;  %v416_v30 = vadd.f32 %v415_v28, %v414_v26 }
 0x115   : > { %v405_v31 = vadd.f32 %v404_v29, %v403_v27  ;;  %v417_v32 = vrot.slane %v416_v30, 2 }
 0x117   : > { %v406_v33 = vrot.slane %v405_v31, 1  ;;  %v418_v34 = vadd.f32 %v417_v32, %v416_v30 }
 0x119   : > { %v419_v35 = vrot.slane %v418_v34, 1  ;;  %v407_v36 = vadd.f32 %v406_v33, %v405_v31 }
 0x11b   : > { %v420_v37 = vadd.f32 %v419_v35, %v418_v34 }
 0x11d   : > { %v422_v38 = vsel %vm421_vm0, %v407_v36, %v420_v37 }
 0x11e   : > { %423 = vst [vmem:[%s248_s30] sm:$0x3] %v422_v38 }
 0x11f PF: > { %s14_s14 = sadd.s32 1, %s696_s14   ;;  %s770_s12 = smov %s692_s13 }
 0x120   : > { %p11_p5 = scmp.ge.s32.totalorder %s14_s14, 6   ;;  %s771_s13 = smov %s773_s15 }
 0x122   :  { %13 = sbr.rel (!%p11_p5) target bundleno = 2 (0x2), region = 73 }

// kernel: generator_forward.4
= control target key start
LH: loop header
LB: loop body
LE: loop exit
PB: predicated region body
PF: predicated region fallthrough
CT: control target
= control target key end

     0   :  { %v297_v1 = vmov 0   ;;  %vm113_vm0 = vcmask 392192   ;;  %v33_v14 = vlaneseq  ;;  %s378_s1 = inlined_call_operand.vmem [shape: bf16[48,512], index: 1, kind: input, shape index: {}]   ;;  %s379_s0 = inlined_call_operand.vmem [shape: bf16[8,48], index: 0, kind: input, shape index: {}]   ;;  %s380_s3 = inlined_call_operand.vmem [shape: f32[1,512], index: 3, kind: input, shape index: {}]   ;;  %s381_s2 = inlined_call_operand.vmem [shape: f32[1,512], index: 2, kind: input, shape index: {}]   ;;  %s382_s4 = inlined_call_operand.vmem [shape: bf16[8,512], index: 4, kind: output, shape index: {}]  }
   0x1   :  { %v279_v0 = vld [vmem:[%s378_s1 + $0x4] ss:$16 sps:$4 sm:$0xff]   ;;  %149 = vmatprep.mubr.bf16.mxu0 %v297_v1  ;;  %190 = vmatprep.mubr.bf16.mxu1 %v297_v1  ;;  %v281_v2 = vld [vmem:[%s378_s1 + $0xc] ss:$16 sps:$4 sm:$0xff]   ;;  %v283_v3 = vld [vmem:[%s378_s1] ss:$16 sps:$4 sm:$0xff]  }
   0x2   :  { %117 = vmatprep.subr.bf16.mxu0 %v279_v0  ;;  %v284_v4 = vld [vmem:[%s378_s1 + $0x8] ss:$16 sps:$4 sm:$0xff]   ;;  %158 = vmatprep.subr.bf16.mxu1 %v281_v2  ;;  %v285_v5 = vld [vmem:[%s378_s1 + $0x24] ss:$16 sps:$4 sm:$0xff]   ;;  %v287_v6 = vld [vmem:[%s378_s1 + $0x2c] ss:$16 sps:$4 sm:$0xff]  }
   0x3   :  { %118 = vmatpush1.bf16.msra.mxu0 %v283_v3  ;;  %159 = vmatpush1.bf16.msra.mxu1 %v284_v4  ;;  %v289_v7 = vld [vmem:[%s378_s1 + $0x20] ss:$16 sps:$4 sm:$0xff]   ;;  %v290_v8 = vld [vmem:[%s378_s1 + $0x28] ss:$16 sps:$4 sm:$0xff]   ;;  %v291_v9 = vld [vmem:[%s378_s1 + $0x44] ss:$16 sps:$4 sm:$0xff]  }
   0x4   :  { %119 = vmatprep.subr.bf16.mxu0 %v285_v5  ;;  %160 = vmatprep.subr.bf16.mxu1 %v287_v6  ;;  %v293_v10 = vld [vmem:[%s378_s1 + $0x4c] ss:$16 sps:$4 sm:$0xff]   ;;  %v295_v11 = vld [vmem:[%s378_s1 + $0x40] ss:$16 sps:$4 sm:$0xff]   ;;  %v296_v12 = vld [vmem:[%s378_s1 + $0x48] ss:$16 sps:$4 sm:$0xff]  }
   0x5   :  { %v18_v13 = vld [vmem:[%s379_s0] sm:$0xf]  ;;  %v34_v16 = vshrl.u32 %v33_v14, 7 }
   0x6   :  { %v211_v15 = vld [vmem:[%s380_s3] sm:$0xf] }
   0x7   :  { %120 = vmatpush1.bf16.msra.mxu0 %v289_v7  ;;  %161 = vmatpush1.bf16.msra.mxu1 %v290_v8  ;;  %vm212_vm1 = vcmp.gt.f32.partialorder %v211_v15, 0.0  ;;  %v35_v17 = vsub.s32 0, %v34_v16  ;;  %v43_v18 = vsub.s32 2, %v34_v16  ;;  %v31_v20 = vld [vmem:[%s381_s2] sm:$0xf]  ;;  %v39_v21 = vsub.s32 1, %v34_v16 }
   0x8   :  { %121 = vmatprep.subr.bf16.mxu0 %v291_v9  ;;  %162 = vmatprep.subr.bf16.mxu1 %v293_v10  ;;  %v213_v19 = vsel %vm212_vm1, 1, %v297_v1  ;;  %v47_v22 = vsub.s32 3, %v34_v16 }
   0x9   :  { %v36_v23 = vrot.slane %v31_v20, %v35_v17  ;;  %v217_v24 = vrot.slane %v213_v19, %v35_v17  ;;  %v44_v25 = vrot.slane %v31_v20, %v43_v18  ;;  %v225_v26 = vrot.slane %v213_v19, %v43_v18 }
   0xa   :  { %v40_v27 = vrot.slane %v31_v20, %v39_v21  ;;  %v221_v28 = vrot.slane %v213_v19, %v39_v21  ;;  %v48_v29 = vrot.slane %v31_v20, %v47_v22  ;;  %v229_v30 = vrot.slane %v213_v19, %v47_v22 }
   0xb   :  { %122 = vmatpush1.bf16.msra.mxu0 %v295_v11  ;;  %163 = vmatpush1.bf16.msra.mxu1 %v296_v12  ;;  %vm230_vm2 = vcmp.eq.s32.totalorder %v217_v24, 1  ;;  %vm232_vm3 = vcmp.eq.s32.totalorder %v225_v26, 1 }
   0xc   :  { %vm231_vm4 = vcmp.eq.s32.totalorder %v221_v28, 1  ;;  %vm233_vm5 = vcmp.eq.s32.totalorder %v229_v30, 1 }
   0xe   :  { %272 = vmatmul.mubr.msk.bf16.vlgmr.msra.gmra.mrb[0].mxu0 %vm113_vm0, %v18_v13  ;;  %273 = vmatmul.mubr.msk.bf16.vlgmr.msra.gmra.mrb[0].mxu1 %vm113_vm0, %v18_v13 }
  0xe1   :  { %v151_v31 = vpop.f32.mrb[0].mxu0  ;;  %v192_v32 = vpop.f32.mrb[0].mxu1 }
  0xe2   :  { %v152_v33 = vadd.f32 %v151_v31, %v36_v23  ;;  %v193_v34 = vadd.f32 %v192_v32, %v44_v25  ;;  %v153_v35 = vpop.f32.mrb[1].mxu0  ;;  %v194_v36 = vpop.f32.mrb[1].mxu1 }
  0xe3   :  { %v154_v37 = vadd.f32 %v153_v35, %v40_v27  ;;  %v195_v38 = vadd.f32 %v194_v36, %v48_v29  ;;  %v155_v39 = vpop.f32.mrb[2].mxu0  ;;  %v196_v40 = vpop.f32.mrb[2].mxu1 }
  0xe4   :  { %vm199_vm6 = vcmp.ge.f32.partialorder %v152_v33, 0.0  ;;  %v203_v41 = vmul.f32 0.2, %v152_v33  ;;  %vm201_vm7 = vcmp.ge.f32.partialorder %v193_v34, 0.0  ;;  %v205_v42 = vmul.f32 0.2, %v193_v34 }
  0xe5   :  { %vm200_vm8 = vcmp.ge.f32.partialorder %v154_v37, 0.0  ;;  %v204_v43 = vmul.f32 0.2, %v154_v37  ;;  %vm202_vm9 = vcmp.ge.f32.partialorder %v195_v38, 0.0  ;;  %v206_v44 = vmul.f32 0.2, %v195_v38 }
  0xe6   :  { %v207_v45 = vsel %vm199_vm6, %v152_v33, %v203_v41  ;;  %v209_v46 = vsel %vm201_vm7, %v193_v34, %v205_v42  ;;  %v156_v47 = vpop.f32.mrb[3].mxu0  ;;  %v197_v48 = vpop.f32.mrb[3].mxu1 }
  0xe7   :  { %v234_v49 = vsel %vm230_vm2, %v207_v45, %v152_v33  ;;  %v236_v50 = vsel %vm232_vm3, %v209_v46, %v193_v34  ;;  %v208_v51 = vsel %vm200_vm8, %v154_v37, %v204_v43  ;;  %v210_v52 = vsel %vm202_vm9, %v195_v38, %v206_v44 }
  0xe8   :  { %v235_v53 = vsel %vm231_vm4, %v208_v51, %v154_v37  ;;  %v237_v54 = vsel %vm233_vm5, %v210_v52, %v195_v38 }
  0xe9   :  { %v276_v55 = vpack.c.bf16 %v235_v53, %v234_v49  ;;  %v277_v56 = vpack.c.bf16 %v237_v54, %v236_v50 }
  0xeb   :  { %254 = vst [vmem:[%s382_s4] sm:$0xff] %v276_v55  ;;  %255 = vst [vmem:[%s382_s4 + $0x8] sm:$0xff] %v277_v56 }

// kernel: generator_forward.7
= control target key start
LH: loop header
LB: loop body
LE: loop exit
PB: predicated region body
PF: predicated region fallthrough
CT: control target
= control target key end

     0   :  { %s772_s12 = smov 0   ;;  %s774_s13 = smov 0   ;;  %s852_s0 = inlined_call_operand.vmem [shape: bf16[4,128,64], index: 0, kind: input, shape index: {}]   ;;  %s853_s1 = inlined_call_operand.vmem [shape: bf16[4,64,128], index: 1, kind: input, shape index: {}]   ;;  %s854_s2 = inlined_call_operand.vmem [shape: f32[1,128], index: 2, kind: input, shape index: {}]   ;;  %s855_s3 = inlined_call_operand.vmem [shape: f32[4,128,128], index: 3, kind: output, shape index: {}]  }
   0x1   :  { %s776_s14 = smov 0  }
   0x2 LB: > { %s25_s15 = sadd.s32 1, %s746_s13  ;;  %p583_p0 = scmp.ge.s32.totalorder %s750_s14, 1  ;;  %s750_s14 = sphi %s776_s14, %s13_s14   ;;  %s746_s13 = sphi %s774_s13, %s857_s13   ;;  %s742_s12 = sphi %s772_s12, %s856_s12  }
   0x3   : > { %p27_p1 = scmp.ge.s32.totalorder %s25_s15, 4  ;;  %p168_p2 = scmp.lt.s32.totalorder %s750_s14, 5 }
   0x5   : > { %s859_s15 = smov (%p27_p1, %s25_s15), 0  ;;  %p169_p3 = pnand %p583_p0, %p168_p2 }
   0x6   : > { %p206_p4 = scmp.lt.s32.totalorder (!%p169_p3), %s742_s12, 3  ;;  %vm326_vm0 = vcmask (!%p169_p3), 523264   ;;  %v590_v12 = vld [vmem:[%s854_s2] ss:$0 sm:$0xff] (!%p169_p3) }
   0x7   : > { %172 = sbr.rel (%p169_p3) target bundleno = 275 (0x113), region = 32 }
   0xe   : > { %s861_s12 = smov (!%p206_p4, %s742_s12), 3 }
   0xf   : > { %s613_s16 = sshll.u32 %s861_s12, 6  ;;  %s614_s17 = sshll.u32 %s861_s12, 5 }
  0x10   : > { %s219_s20 = scalar_lea.vmem %s853_s1, %s614_s17  ;;  %s800_s23 = scalar_lea.vmem %s852_s0, %s613_s16 }
  0x11   : > { %v684_v0 = vld [vmem:[%s219_s20] sm:$0xff]   ;;  %v685_v1 = vld [vmem:[%s219_s20 + $0x8] sm:$0xff]   ;;  %v686_v2 = vld [vmem:[%s219_s20 + $0x10] sm:$0xff]   ;;  %s615_s26 = sshll.u32 %s861_s12, 7 }
  0x12   : > { %628 = vmatprep.subr.bf16.mxu0 %v684_v0  ;;  %652 = vmatprep.subr.bf16.mxu1 %v684_v0  ;;  %v688_v3 = vld [vmem:[%s800_s23] sm:$0xff]   ;;  %v687_v5 = vld [vmem:[%s219_s20 + $0x18] sm:$0xff]   ;;  %v690_v6 = vld [vmem:[%s800_s23 + $0x8] sm:$0xff]   ;;  %s825_s29 = scalar_lea.vmem %s855_s3, %s615_s26 }
  0x13   : > { %629 = vmatpush3.bf16.msra.mxu0 %v684_v0  ;;  %656 = vmatpush3.bf16.msra.mxu1 %v684_v0  ;;  %v689_v4 = vld [vmem:[%s800_s23 + $0x20] sm:$0xff]   ;;  %v691_v7 = vld [vmem:[%s800_s23 + $0x28] sm:$0xff]   ;;  %v692_v8 = vld [vmem:[%s800_s23 + $0x10] sm:$0xff]  }
  0x14   : > { %630 = vmatprep.subr.bf16.mxu0 %v685_v1  ;;  %653 = vmatprep.subr.bf16.mxu1 %v685_v1  ;;  %v693_v9 = vld [vmem:[%s800_s23 + $0x30] sm:$0xff]   ;;  %v694_v10 = vld [vmem:[%s800_s23 + $0x18] sm:$0xff]  }
  0x15   : > { %636 = vmatprep.mubr.msk.bf16.mxu0 %vm326_vm0, %v688_v3  ;;  %644 = vmatprep.mubr.msk.bf16.mxu1 %vm326_vm0, %v689_v4  ;;  %v695_v11 = vld [vmem:[%s800_s23 + $0x38] sm:$0xff]  }
  0x17   : > { %631 = vmatpush3.bf16.msra.mxu0 %v685_v1  ;;  %657 = vmatpush3.bf16.msra.mxu1 %v685_v1 }
  0x18   : > { %632 = vmatprep.subr.bf16.mxu0 %v686_v2  ;;  %654 = vmatprep.subr.bf16.mxu1 %v686_v2 }
  0x1b   : > { %633 = vmatpush3.bf16.msra.mxu0 %v686_v2  ;;  %658 = vmatpush3.bf16.msra.mxu1 %v686_v2 }
  0x1c   : > { %634 = vmatprep.subr.bf16.mxu0 %v687_v5  ;;  %655 = vmatprep.subr.bf16.mxu1 %v687_v5 }
  0x1f   : > { %635 = vmatpush3.bf16.msra.mxu0 %v687_v5  ;;  %659 = vmatpush3.bf16.msra.mxu1 %v687_v5 }
  0x22   : > { %637 = vmatmul.mubr.msk.bf16.vlgmr.msra.gmra.mrb[0].mxu0 %vm326_vm0, %v690_v6  ;;  %645 = vmatmul.mubr.msk.bf16.vlgmr.msra.gmra.mrb[0].mxu1 %vm326_vm0, %v691_v7 }
  0x23   : > { %640 = vmatprep.mubr.msk.bf16.mxu0 %vm326_vm0, %v692_v8  ;;  %648 = vmatprep.mubr.msk.bf16.mxu1 %vm326_vm0, %v693_v9 }
  0x2a   : > { %641 = vmatmul.mubr.msk.bf16.gmra.mrb[4].mxu0 %vm326_vm0, %v694_v10  ;;  %649 = vmatmul.mubr.msk.bf16.gmra.mrb[4].mxu1 %vm326_vm0, %v695_v11 }
  0xf5   : > { %v638_v13 = vpop.f32.mrb[0].mxu0  ;;  %v646_v14 = vpop.f32.mrb[0].mxu1 }
  0xf6   : > { %v394_v15 = vadd.f32 %v638_v13, %v590_v12  ;;  %v426_v16 = vadd.f32 %v646_v14, %v590_v12  ;;  %v385_v17 = vpop.f32.mrb[1].mxu0  ;;  %v417_v18 = vpop.f32.mrb[1].mxu1 }
  0xf7   : > { %v386_v19 = vadd.f32 %v590_v12, %v385_v17  ;;  %v418_v20 = vadd.f32 %v590_v12, %v417_v18  ;;  %v639_v21 = vpop.f32.mrb[2].mxu0  ;;  %v647_v22 = vpop.f32.mrb[2].mxu1 }
  0xf8   : > { %696 = vtanh.f32 %v394_v15  ;;  %v397_v23 = vadd.f32 %v639_v21, %v590_v12  ;;  %v388_v24 = vpop.f32.mrb[3].mxu0  ;;  %v420_v25 = vpop.f32.mrb[3].mxu1  ;;  %v429_v26 = vadd.f32 %v647_v22, %v590_v12 }
  0xf9   : > { %698 = vtanh.f32 %v426_v16  ;;  %v389_v27 = vadd.f32 %v590_v12, %v388_v24  ;;  %v421_v28 = vadd.f32 %v590_v12, %v420_v25 }
  0xfa   : > { %700 = vtanh.f32 %v386_v19 }
  0xfb   : > { %702 = vtanh.f32 %v418_v20 }
  0xfc   : > { %704 = vtanh.f32 %v397_v23 }
  0xfd   : > { %706 = vtanh.f32 %v429_v26  ;;  %v642_v29 = vpop.f32.mrb[4].mxu0  ;;  %v650_v30 = vpop.f32.mrb[4].mxu1 }
  0xfe   : > { %708 = vtanh.f32 %v389_v27  ;;  %v410_v31 = vadd.f32 %v642_v29, %v590_v12  ;;  %v442_v32 = vadd.f32 %v650_v30, %v590_v12  ;;  %v401_v33 = vpop.f32.mrb[5].mxu0  ;;  %v433_v34 = vpop.f32.mrb[5].mxu1 }
  0xff   : > { %710 = vtanh.f32 %v421_v28  ;;  %v402_v35 = vadd.f32 %v590_v12, %v401_v33  ;;  %v434_v36 = vadd.f32 %v590_v12, %v433_v34  ;;  %v643_v37 = vpop.f32.mrb[6].mxu0  ;;  %v651_v38 = vpop.f32.mrb[6].mxu1 }
 0x100   : > { %712 = vtanh.f32 %v410_v31  ;;  %v413_v39 = vadd.f32 %v643_v37, %v590_v12  ;;  %v404_v40 = vpop.f32.mrb[7].mxu0  ;;  %v436_v41 = vpop.f32.mrb[7].mxu1  ;;  %v445_v42 = vadd.f32 %v651_v38, %v590_v12 }
 0x101   : > { %714 = vtanh.f32 %v442_v32  ;;  %v405_v44 = vadd.f32 %v590_v12, %v404_v40  ;;  %v437_v46 = vadd.f32 %v590_v12, %v436_v41 }
 0x102   : > { %v697_v43 = vpop.eup %696  ;;  %716 = vtanh.f32 %v402_v35 }
 0x103   : > { %v699_v45 = vpop.eup %698  ;;  %466 = vst [vmem:[%s825_s29 + $0x10] sm:$0xff] %v697_v43  ;;  %718 = vtanh.f32 %v434_v36 }
 0x104   : > { %v701_v47 = vpop.eup %700  ;;  %474 = vst [vmem:[%s825_s29 + $0x50] sm:$0xff] %v699_v45  ;;  %720 = vtanh.f32 %v413_v39 }
 0x105   : > { %v703_v48 = vpop.eup %702  ;;  %464 = vst [vmem:[%s825_s29] sm:$0xff] %v701_v47  ;;  %722 = vtanh.f32 %v445_v42 }
 0x106   : > { %v705_v49 = vpop.eup %704  ;;  %472 = vst [vmem:[%s825_s29 + $0x40] sm:$0xff] %v703_v48  ;;  %724 = vtanh.f32 %v405_v44 }
 0x107   : > { %v707_v50 = vpop.eup %706  ;;  %467 = vst [vmem:[%s825_s29 + $0x18] sm:$0xff] %v705_v49  ;;  %726 = vtanh.f32 %v437_v46 }
 0x108   : > { %v709_v51 = vpop.eup %708  ;;  %475 = vst [vmem:[%s825_s29 + $0x58] sm:$0xff] %v707_v50 }
 0x109   : > { %v711_v52 = vpop.eup %710  ;;  %465 = vst [vmem:[%s825_s29 + $0x8] sm:$0xff] %v709_v51 }
 0x10a   : > { %v713_v53 = vpop.eup %712  ;;  %473 = vst [vmem:[%s825_s29 + $0x48] sm:$0xff] %v711_v52 }
 0x10b   : > { %v715_v54 = vpop.eup %714  ;;  %470 = vst [vmem:[%s825_s29 + $0x30] sm:$0xff] %v713_v53 }
 0x10c   : > { %v717_v55 = vpop.eup %716  ;;  %478 = vst [vmem:[%s825_s29 + $0x70] sm:$0xff] %v715_v54 }
 0x10d   : > { %v719_v56 = vpop.eup %718  ;;  %468 = vst [vmem:[%s825_s29 + $0x20] sm:$0xff] %v717_v55 }
 0x10e   : > { %v721_v57 = vpop.eup %720  ;;  %476 = vst [vmem:[%s825_s29 + $0x60] sm:$0xff] %v719_v56 }
 0x10f   : > { %v723_v58 = vpop.eup %722  ;;  %471 = vst [vmem:[%s825_s29 + $0x38] sm:$0xff] %v721_v57 }
 0x110   : > { %v725_v59 = vpop.eup %724  ;;  %479 = vst [vmem:[%s825_s29 + $0x78] sm:$0xff] %v723_v58 }
 0x111   : > { %v727_v60 = vpop.eup %726  ;;  %469 = vst [vmem:[%s825_s29 + $0x28] sm:$0xff] %v725_v59 }
 0x112   : > { %477 = vst [vmem:[%s825_s29 + $0x68] sm:$0xff] %v727_v60 }
 0x113 PF: > { %s13_s14 = sadd.s32 1, %s750_s14   ;;  %s856_s12 = smov %s746_s13 }
 0x114   : > { %p10_p5 = scmp.ge.s32.totalorder %s13_s14, 6   ;;  %s857_s13 = smov %s859_s15 }
 0x116   :  { %12 = sbr.rel (!%p10_p5) target bundleno = 2 (0x2), region = 65 }

</bundles_post_ra>
